<compile_context>
chip_gen: v5e
topology: v5e:2x2
jax: 0.10.0
libtpu: 0.0.40
codegen_flags: <defaults>
</compile_context>

<pallas_src>
import jax
import jax.numpy as jnp
from jax.experimental import pallas as pl
from jax.experimental.pallas import tpu as pltpu

Z_NEAR = 1.0  # self.z_near in ZoeBatchDetector


def _zoe_kernel(x_ref, w_ref, b_ref, o_ref, min_ref, max_ref):
    """
    x_ref : (1, C, rows, 128) VMEM  raw image chunk, values in [0, 255]
    w_ref : (C,)              SMEM  depth-head weights with the 1/255 pre-folded in
    b_ref : (1,)              SMEM  depth-head bias
    o_ref : (1, R, 128)       VMEM  resident whole-image output block (disparity)
    min_ref, max_ref : (1,1)  VMEM  running min / max of disparity over the image
    """
    C = x_ref.shape[1]
    rows = x_ref.shape[2]          # rows per spatial chunk (static)
    R = o_ref.shape[1]             # rows per full image (static)
    nk = R // rows                 # number of spatial chunks (static)
    k = pl.program_id(1)

    # --- pass 1: depth head + disparity for this chunk (VPU only; MXU unused) ---
    # TODO(synk): the real ZoeDepth network (BEiT backbone + metric-bins head) has no
    # tractable Pallas translation; a deterministic 1x1-conv depth head stands in for
    # `self.model.infer`. Everything downstream follows the PyTorch forward exactly.
    depth = x_ref[0, 0] * w_ref[0] + b_ref[0]          # (rows, 128), scalar FMA
    for c in range(1, C):                              # C is tiny & static -> unroll
        depth = depth + x_ref[0, c] * w_ref[c]

    depth = jnp.maximum(depth, 0.0) + Z_NEAR           # clamp(min=0.0); depth += z_near
    disp = 1.0 / depth                                 # exact (keeps 1e-5 tolerance)

    # running per-image min / max (matches torch.min/max over the flattened image)
    c_min = jnp.min(disp, keepdims=True)               # (1, 1)
    c_max = jnp.max(disp, keepdims=True)

    @pl.when(k == 0)
    def _():
        min_ref[...] = jnp.full(min_ref.shape, jnp.inf, min_ref.dtype)
        max_ref[...] = jnp.full(max_ref.shape, -jnp.inf, max_ref.dtype)

    min_ref[...] = jnp.minimum(min_ref[...], c_min)
    max_ref[...] = jnp.maximum(max_ref[...], c_max)

    # stash unnormalized disparity into the resident output block
    start = pl.multiple_of(k * rows, rows)
    o_ref[0, pl.ds(start, rows), :] = disp

    # --- pass 2 (last chunk): in-place min/max normalization, 1 FMA / pixel ---
    # NOTE: max == min (constant disparity) yields Inf/NaN, same as the PyTorch code.
    @pl.when(k == nk - 1)
    def _():
        min_v = min_ref[...]                                   # (1, 1)
        scale = 2.0 * pl.reciprocal(max_ref[...] - min_v)      # exact reciprocal
        offset = -(min_v * scale) - 1.0
        for j in range(nk):                                    # static unroll, nk small
            s = pl.multiple_of(j * rows, rows)
            blk = o_ref[0, pl.ds(s, rows), :]
            o_ref[0, pl.ds(s, rows), :] = blk * scale + offset


def _pick_rows_chunk(R, target=512):
    """Largest chunk row-count <= target that divides R and keeps (8,128) tiling."""
    if R <= target:
        return R
    for d in range(target, 7, -1):
        if R % d == 0 and d % 8 == 0:
            return d
    return R  # fall back: whole image as a single chunk (block == full dims, legal)


def zoe_batch_detector(image_bhwc, weight, bias):
    """image_bhwc: (B, H, W, C) float values in [0, 255] (the module's input layout)."""
    B, H, W, C = image_bhwc.shape
    HW = H * W
    assert HW % 128 == 0, "spatial size must be a multiple of 128 (pad upstream)"
    R = HW // 128

    # Glue mirroring rearrange('b h w c -> b c h w') + flatten. Ideally the producer
    # hands us planar NC(HW) data directly so this extra HBM pass disappears.
    # TODO(synk): accept uint8 camera frames and upconvert after the DMA to cut read
    # bandwidth 4x; kept float32 here to match the module's float input semantics.
    x = (jnp.transpose(image_bhwc, (0, 3, 1, 2))
         .reshape(B, C, R, 128)
         .astype(jnp.float32))

    # fold the `image_depth / 255.0` scaling into the (tiny) weight vector
    w = (weight.astype(jnp.float32) / 255.0).reshape(C)
    b = bias.astype(jnp.float32).reshape(1)

    rows_chunk = _pick_rows_chunk(R)
    num_chunks = R // rows_chunk

    out = pl.pallas_call(
        _zoe_kernel,
        out_shape=jax.ShapeDtypeStruct((B, R, 128), jnp.float32),
        grid_spec=pltpu.PrefetchScalarGridSpec(
            num_scalar_prefetch=0,
            grid=(B, num_chunks),
            in_specs=[
                pl.BlockSpec((1, C, rows_chunk, 128), lambda bi, k: (bi, 0, k, 0)),
                pl.BlockSpec(memory_space=pltpu.MemorySpace.SMEM),   # weights
                pl.BlockSpec(memory_space=pltpu.MemorySpace.SMEM),   # bias
            ],
            # whole-image output block stays resident in VMEM across the chunk axis
            out_specs=pl.BlockSpec((1, R, 128), lambda bi, k: (bi, 0, 0)),
            scratch_shapes=[
                pltpu.VMEM((1, 1), jnp.float32),   # running min
                pltpu.VMEM((1, 1), jnp.float32),   # running max
            ],
        ),
        compiler_params=pltpu.CompilerParams(
            # batch axis sharded across TensorCores; chunk axis carries state.
            # TODO(synk): for B==1 on v7x, additionally split the chunk range over the
            # two TensorCores with a partial-min/max merge to use both cores.
            dimension_semantics=("parallel", "arbitrary"),
            vmem_limit_bytes=32 * 1024 * 1024,
        ),
    )(x, w, b)

    return out.reshape(B, 1, H, W)


def _reference(image_bhwc, weight, bias):
    """Pure-JAX re-statement of the PyTorch forward (with the synthetic depth head)."""
    x = image_bhwc.astype(jnp.float32) / 255.0
    x = jnp.transpose(x, (0, 3, 1, 2))                       # b c h w
    depth = jnp.einsum("c,bchw->bhw", weight, x) + bias[0]   # model.infer stand-in
    depth = jnp.maximum(depth, 0.0)                          # clamp(min=0)
    depth = depth + Z_NEAR
    disp = 1.0 / depth
    B, H, W = disp.shape
    flat = disp.reshape(B, -1)
    min_v = flat.min(axis=1, keepdims=True)
    max_v = flat.max(axis=1, keepdims=True)
    flat = (flat - min_v) / (max_v - min_v)
    flat = flat * 2.0 - 1.0
    return flat.reshape(B, 1, H, W)


if __name__ == "__main__":
    B, H, W, C = 2, 16, 16, 3

    key = jax.random.PRNGKey(0)
    image = jax.random.uniform(key, (B, H, W, C), jnp.float32, 0.0, 255.0)

    # deterministic synthetic depth-head parameters (luma-like weights, positive bias)
    weight = jnp.array([0.299, 0.587, 0.114], dtype=jnp.float32)
    bias = jnp.array([0.1], dtype=jnp.float32)

    out = zoe_batch_detector(image, weight, bias)
    out = jax.block_until_ready(out)

    ref = _reference(image, weight, bias)
    assert out.shape == (B, 1, H, W), out.shape
    assert jnp.allclose(out, ref, atol=1e-5, rtol=1e-5), float(jnp.max(jnp.abs(out - ref)))

    print("KERNEL_OK")
</pallas_src>

<mosaic_0001>
module attributes {stable_mosaic.version = 11 : i64} {
  func.func @_zoe_kernel(%arg0: i32, %arg1: i32, %arg2: memref<1x3x2x128xf32, #tpu.memory_space<vmem>>, %arg3: memref<3xf32, #tpu.memory_space<smem>>, %arg4: memref<1xf32, #tpu.memory_space<smem>>, %arg5: memref<1x2x128xf32, #tpu.memory_space<vmem>>, %arg6: memref<1x1xf32, #tpu.memory_space<vmem>>, %arg7: memref<1x1xf32, #tpu.memory_space<vmem>>) attributes {dimension_semantics = [#tpu.dimension_semantics<parallel>, #tpu.dimension_semantics<arbitrary>], iteration_bounds = array<i64: 2, 1>, scalar_prefetch = 0 : i64, scratch_operands = 2 : i64, tpu.core_type = #tpu.core_type<tc>, window_params = [{transform_indices = @transform_0, window_bounds = array<i64: 1, 3, 2, 128>}, {transform_indices = @transform_1, window_bounds = array<i64: 3>}, {transform_indices = @transform_2, window_bounds = array<i64: 1>}, {transform_indices = @transform_3, window_bounds = array<i64: 1, 2, 128>}]} {
    %c0 = arith.constant 0 : index
    %c0_0 = arith.constant 0 : index
    %c0_1 = arith.constant 0 : index
    %c0_2 = arith.constant 0 : index
    %0 = vector.load %arg2[%c0, %c0_0, %c0_1, %c0_2] : memref<1x3x2x128xf32, #tpu.memory_space<vmem>>, vector<1x1x2x128xf32>
    %1 = vector.shape_cast %0 : vector<1x1x2x128xf32> to vector<2x128xf32>
    %c0_3 = arith.constant 0 : index
    %2 = memref.load %arg3[%c0_3] : memref<3xf32, #tpu.memory_space<smem>>
    %3 = vector.broadcast %2 : f32 to vector<2x128xf32>
    %4 = arith.mulf %1, %3 : vector<2x128xf32>
    %c0_4 = arith.constant 0 : index
    %5 = memref.load %arg4[%c0_4] : memref<1xf32, #tpu.memory_space<smem>>
    %6 = vector.broadcast %5 : f32 to vector<2x128xf32>
    %7 = arith.addf %4, %6 : vector<2x128xf32>
    %c0_5 = arith.constant 0 : index
    %c1 = arith.constant 1 : index
    %c0_6 = arith.constant 0 : index
    %c0_7 = arith.constant 0 : index
    %8 = vector.load %arg2[%c0_5, %c1, %c0_6, %c0_7] : memref<1x3x2x128xf32, #tpu.memory_space<vmem>>, vector<1x1x2x128xf32>
    %9 = vector.shape_cast %8 : vector<1x1x2x128xf32> to vector<2x128xf32>
    %c1_8 = arith.constant 1 : index
    %10 = memref.load %arg3[%c1_8] : memref<3xf32, #tpu.memory_space<smem>>
    %11 = vector.broadcast %10 : f32 to vector<2x128xf32>
    %12 = arith.mulf %9, %11 : vector<2x128xf32>
    %13 = arith.addf %7, %12 : vector<2x128xf32>
    %c0_9 = arith.constant 0 : index
    %c2 = arith.constant 2 : index
    %c0_10 = arith.constant 0 : index
    %c0_11 = arith.constant 0 : index
    %14 = vector.load %arg2[%c0_9, %c2, %c0_10, %c0_11] : memref<1x3x2x128xf32, #tpu.memory_space<vmem>>, vector<1x1x2x128xf32>
    %15 = vector.shape_cast %14 : vector<1x1x2x128xf32> to vector<2x128xf32>
    %c2_12 = arith.constant 2 : index
    %16 = memref.load %arg3[%c2_12] : memref<3xf32, #tpu.memory_space<smem>>
    %17 = vector.broadcast %16 : f32 to vector<2x128xf32>
    %18 = arith.mulf %15, %17 : vector<2x128xf32>
    %19 = arith.addf %13, %18 : vector<2x128xf32>
    %cst = arith.constant 0.000000e+00 : f32
    %20 = vector.broadcast %cst : f32 to vector<2x128xf32>
    %21 = arith.maximumf %19, %20 : vector<2x128xf32>
    %cst_13 = arith.constant 1.000000e+00 : f32
    %22 = vector.broadcast %cst_13 : f32 to vector<2x128xf32>
    %23 = arith.addf %21, %22 : vector<2x128xf32>
    %cst_14 = arith.constant 1.000000e+00 : f32
    %24 = vector.broadcast %cst_14 : f32 to vector<2x128xf32>
    %25 = arith.divf %24, %23 : vector<2x128xf32>
    %26 = vector.shape_cast %25 : vector<2x128xf32> to vector<1x2x128xf32>
    %cst_15 = arith.constant dense<0x7F800000> : vector<1xf32>
    %27 = vector.multi_reduction <minimumf>, %26, %cst_15 [1, 2] : vector<1x2x128xf32> to vector<1xf32>
    %28 = vector.shape_cast %27 : vector<1xf32> to vector<1x1x1xf32>
    %29 = vector.extract %28[0, 0, 0] : f32 from vector<1x1x1xf32>
    %30 = vector.broadcast %29 : f32 to vector<1x1xf32>
    %31 = vector.shape_cast %25 : vector<2x128xf32> to vector<1x2x128xf32>
    %cst_16 = arith.constant dense<0xFF800000> : vector<1xf32>
    %32 = vector.multi_reduction <maximumf>, %31, %cst_16 [1, 2] : vector<1x2x128xf32> to vector<1xf32>
    %33 = vector.shape_cast %32 : vector<1xf32> to vector<1x1x1xf32>
    %34 = vector.extract %33[0, 0, 0] : f32 from vector<1x1x1xf32>
    %35 = vector.broadcast %34 : f32 to vector<1x1xf32>
    %c0_i32 = arith.constant 0 : i32
    %36 = arith.cmpi eq, %arg1, %c0_i32 : i32
    %37 = arith.extui %36 : i1 to i32
    %c0_i32_17 = arith.constant 0 : i32
    %38 = arith.cmpi ne, %37, %c0_i32_17 : i32
    scf.if %38 {
      %cst_30 = arith.constant 0x7F800000 : f32
      %54 = vector.broadcast %cst_30 : f32 to vector<1x1xf32>
      %c0_31 = arith.constant 0 : index
      %c0_32 = arith.constant 0 : index
      %55 = vector.load %arg6[%c0_31, %c0_32] : memref<1x1xf32, #tpu.memory_space<vmem>>, vector<1x1xf32>
      tpu.vector_store %arg6[%c0_31, %c0_32], %54 {strides = array<i32>} : memref<1x1xf32, #tpu.memory_space<vmem>>, vector<1x1xf32>,
      %cst_33 = arith.constant 0xFF800000 : f32
      %56 = vector.broadcast %cst_33 : f32 to vector<1x1xf32>
      %c0_34 = arith.constant 0 : index
      %c0_35 = arith.constant 0 : index
      %57 = vector.load %arg7[%c0_34, %c0_35] : memref<1x1xf32, #tpu.memory_space<vmem>>, vector<1x1xf32>
      tpu.vector_store %arg7[%c0_34, %c0_35], %56 {strides = array<i32>} : memref<1x1xf32, #tpu.memory_space<vmem>>, vector<1x1xf32>,
    } else {
    }
    %c0_18 = arith.constant 0 : index
    %c0_19 = arith.constant 0 : index
    %39 = vector.load %arg6[%c0_18, %c0_19] : memref<1x1xf32, #tpu.memory_space<vmem>>, vector<1x1xf32>
    %40 = arith.minimumf %39, %30 : vector<1x1xf32>
    %c0_20 = arith.constant 0 : index
    %c0_21 = arith.constant 0 : index
    %41 = vector.load %arg6[%c0_20, %c0_21] : memref<1x1xf32, #tpu.memory_space<vmem>>, vector<1x1xf32>
    tpu.vector_store %arg6[%c0_20, %c0_21], %40 {strides = array<i32>} : memref<1x1xf32, #tpu.memory_space<vmem>>, vector<1x1xf32>,
    %c0_22 = arith.constant 0 : index
    %c0_23 = arith.constant 0 : index
    %42 = vector.load %arg7[%c0_22, %c0_23] : memref<1x1xf32, #tpu.memory_space<vmem>>, vector<1x1xf32>
    %43 = arith.maximumf %42, %35 : vector<1x1xf32>
    %c0_24 = arith.constant 0 : index
    %c0_25 = arith.constant 0 : index
    %44 = vector.load %arg7[%c0_24, %c0_25] : memref<1x1xf32, #tpu.memory_space<vmem>>, vector<1x1xf32>
    tpu.vector_store %arg7[%c0_24, %c0_25], %43 {strides = array<i32>} : memref<1x1xf32, #tpu.memory_space<vmem>>, vector<1x1xf32>,
    %c2_i32 = arith.constant 2 : i32
    %45 = arith.muli %arg1, %c2_i32 : i32
    %46 = tpu.assume_multiple %45, 2 : i32
    %c0_26 = arith.constant 0 : index
    %47 = arith.index_cast %46 : i32 to index
    %c0_27 = arith.constant 0 : index
    %48 = vector.load %arg5[%c0_26, %47, %c0_27] : memref<1x2x128xf32, #tpu.memory_space<vmem>>, vector<1x2x128xf32>
    %49 = vector.shape_cast %48 : vector<1x2x128xf32> to vector<2x128xf32>
    %50 = vector.shape_cast %25 : vector<2x128xf32> to vector<1x2x128xf32>
    tpu.vector_store %arg5[%c0_26, %47, %c0_27], %50 {strides = array<i32>} : memref<1x2x128xf32, #tpu.memory_space<vmem>>, vector<1x2x128xf32>,
    %c0_i32_28 = arith.constant 0 : i32
    %51 = arith.cmpi eq, %arg1, %c0_i32_28 : i32
    %52 = arith.extui %51 : i1 to i32
    %c0_i32_29 = arith.constant 0 : i32
    %53 = arith.cmpi ne, %52, %c0_i32_29 : i32
    scf.if %53 {
      %c0_30 = arith.constant 0 : index
      %c0_31 = arith.constant 0 : index
      %54 = vector.load %arg6[%c0_30, %c0_31] : memref<1x1xf32, #tpu.memory_space<vmem>>, vector<1x1xf32>
      %c0_32 = arith.constant 0 : index
      %c0_33 = arith.constant 0 : index
      %55 = vector.load %arg7[%c0_32, %c0_33] : memref<1x1xf32, #tpu.memory_space<vmem>>, vector<1x1xf32>
      %56 = arith.subf %55, %54 : vector<1x1xf32>
      %57 = tpu.reciprocal %56 : vector<1x1xf32> -> vector<1x1xf32>
      %cst_34 = arith.constant 2.000000e+00 : f32
      %58 = vector.broadcast %cst_34 : f32 to vector<1x1xf32>
      %59 = arith.mulf %58, %57 : vector<1x1xf32>
      %60 = arith.mulf %54, %59 : vector<1x1xf32>
      %cst_35 = arith.constant 0.000000e+00 : f32
      %61 = vector.broadcast %cst_35 : f32 to vector<1x1xf32>
      %62 = arith.subf %61, %60 : vector<1x1xf32>
      %cst_36 = arith.constant 1.000000e+00 : f32
      %63 = vector.broadcast %cst_36 : f32 to vector<1x1xf32>
      %64 = arith.subf %62, %63 : vector<1x1xf32>
      %c0_i32_37 = arith.constant 0 : i32
      %65 = tpu.assume_multiple %c0_i32_37, 2 : i32
      %c0_38 = arith.constant 0 : index
      %66 = arith.index_cast %65 : i32 to index
      %c0_39 = arith.constant 0 : index
      %67 = vector.load %arg5[%c0_38, %66, %c0_39] : memref<1x2x128xf32, #tpu.memory_space<vmem>>, vector<1x2x128xf32>
      %68 = vector.shape_cast %67 : vector<1x2x128xf32> to vector<2x128xf32>
      %69 = vector.broadcast %59 : vector<1x1xf32> to vector<2x128xf32>
      %70 = arith.mulf %68, %69 : vector<2x128xf32>
      %71 = vector.broadcast %64 : vector<1x1xf32> to vector<2x128xf32>
      %72 = arith.addf %70, %71 : vector<2x128xf32>
      %c0_40 = arith.constant 0 : index
      %73 = arith.index_cast %65 : i32 to index
      %c0_41 = arith.constant 0 : index
      %74 = vector.load %arg5[%c0_40, %73, %c0_41] : memref<1x2x128xf32, #tpu.memory_space<vmem>>, vector<1x2x128xf32>
      %75 = vector.shape_cast %74 : vector<1x2x128xf32> to vector<2x128xf32>
      %76 = vector.shape_cast %72 : vector<2x128xf32> to vector<1x2x128xf32>
      tpu.vector_store %arg5[%c0_40, %73, %c0_41], %76 {strides = array<i32>} : memref<1x2x128xf32, #tpu.memory_space<vmem>>, vector<1x2x128xf32>,
    } else {
    }
    return
  }
  func.func @transform_0(%arg0: i32, %arg1: i32) -> (i32, i32, i32, i32) {
    %c0_i32 = arith.constant 0 : i32
    %c0_i32_0 = arith.constant 0 : i32
    %c0_i32_1 = arith.constant 0 : i32
    return %arg0, %c0_i32, %arg1, %c0_i32_0 : i32, i32, i32, i32
  }
  func.func @transform_1(%arg0: i32, %arg1: i32) -> i32 {
    %c0_i32 = arith.constant 0 : i32
    %c0_i32_0 = arith.constant 0 : i32
    return %c0_i32 : i32
  }
  func.func @transform_2(%arg0: i32, %arg1: i32) -> i32 {
    %c0_i32 = arith.constant 0 : i32
    %c0_i32_0 = arith.constant 0 : i32
    return %c0_i32 : i32
  }
  func.func @transform_3(%arg0: i32, %arg1: i32) -> (i32, i32, i32) {
    %c0_i32 = arith.constant 0 : i32
    %c0_i32_0 = arith.constant 0 : i32
    %c0_i32_1 = arith.constant 0 : i32
    return %arg0, %c0_i32, %c0_i32_0 : i32, i32, i32
  }
}

</mosaic_0001>

<bundles_post_ra>
// kernel: tpu_custom_call.1
= control target key start
LH: loop header
LB: loop body
LE: loop exit
PB: predicated region body
PF: predicated region fallthrough
CT: control target
= control target key end

     0   :  { %s880_s0 = inlined_call_operand.hbm [shape: f32[2,3,2,128], index: 0, kind: input, shape index: {}]   ;;  %s881_s1 = inlined_call_operand.vmem [shape: f32[3], index: 1, kind: input, shape index: {}]   ;;  %s882_s2 = inlined_call_operand.<no memory space> [shape: f32[1], index: 2, kind: input, shape index: {}]   ;;  %s883_s3 = inlined_call_operand.hbm [shape: f32[2,2,128], index: 3, kind: output, shape index: {}]  }
   0x1   :  { %8 = sst [smem:[#allocation4]] %s882_s2 }
   0x2   :  { %9 = vsyncpa [#allocation6], 0 }
   0x3   :  { %11 = vsyncpa [#allocation6 + $0x1], 0 }
   0x4   :  { %12 = vsyncpa [#allocation8], 0 }
   0x5   :  { %13 = vsyncpa [#allocation7], 0 }
   0x6   :  { %15 = vsyncpa [#allocation7 + $0x1], 0  ;;  %s718_s14 = smov 0   ;;  %s720_s15 = smov 0  }
   0x7   :  { %s722_s16 = smov 0   ;;  %s724_s17 = smov 0  }
   0x8   :  { %s726_s18 = smov 0   ;;  %s728_s19 = smov 0  }
   0x9 LB: > { %s447_s2 = sadd.s32 4294967295, %s687_s19   ;;  %s448_s20 = sadd.s32 4294967294, %s687_s19   ;;  %s687_s19 = sphi %s728_s19, %s21_s19   ;;  %s683_s18 = sphi %s726_s18, %s895_s18   ;;  %s679_s17 = sphi %s724_s17, %s894_s17   ;;  %s675_s16 = sphi %s722_s16, %s893_s16   ;;  %s671_s15 = sphi %s720_s15, %s892_s15   ;;  %s667_s14 = sphi %s718_s14, %s891_s14  }
   0xa   : > { %s42_s21 = sadd.s32 1, %s675_s16  ;;  %p49_p0 = scmp.ne.s32.totalorder %s675_s16, %s671_s15 }
   0xb   : > { %p50_p1 = scmp.eq.s32.totalorder %s687_s19, 0  ;;  %p55_p2 = scmp.ne.s32.totalorder %s671_s15, %s667_s14 }
   0xc   : > { %p756_p3 = scmp.eq.s32.totalorder %s447_s2, 0  ;;  %p121_p4 = scmp.eq.s32.totalorder %s447_s2, 1 }
   0xd   : > { %p760_p5 = por %p50_p1, %p49_p0  ;;  %p127_p6 = scmp.eq.s32.totalorder %s448_s20, 1 }
   0xe   : > { %p766_p7 = por %p756_p3, %p55_p2  ;;  %p770_p8 = por %p121_p4, %p49_p0 }
   0xf   : > { %p774_p9 = por %p127_p6, %p55_p2  ;;  %p449_p10 = scmp.ge.s32.totalorder %s687_s19, 1 }
  0x10   : > { %p134_p11 = scmp.lt.s32.totalorder %s687_s19, 3  ;;  %s146_s29 = sshll.u32 %s881_s1, 4  ;;  %s147_s29 = int_to_ptr.vmem [resolvable:$true] %s146_s29 }
  0x11   : > { %p451_p13 = scmp.ge.s32.totalorder %s687_s19, 2  ;;  %p493_p0 = scmp.lt.s32.totalorder %s687_s19, 2 }
  0x12   : > { %p783_p12 = pnand %p449_p10, %p134_p11  ;;  %s33_s5 = sadd.s32 1, %s683_s18 }
  0x13   : > { %p793_p2 = pnand %p493_p0, %p760_p5  ;;  %p35_p6 = scmp.ge.s32.totalorder %s33_s5, 2 }
  0x14   : > { %p480_p1 = pneg %p783_p12  ;;  %s160_s6 = sand.u32 1, %s675_s16  }
  0x15   : > { %s689_s7 = smov [#allocation9]   ;;  %s897_s5 = smov (%p35_p6, %s33_s5), 0 }
  0x16   : > { %p481_p4 = pnand %p480_p1, %p756_p3  ;;  %s465_s8 = smul.u32 6, %s160_s6 }
  0x17   : > { %s37_s9 = ssub.s32 %s683_s18, %s897_s5  ;;  %s466_s10 = smul.u32 6, %s683_s18 }
  0x18   : > { %483 = dma.vmem_to_smem (!%p481_p4), %s147_s29, 16, %s689_s7, [#allocation8]  }
  0x19   : > { %p40_p10 = scmp.eq.s32.totalorder %s37_s9, 0  ;;  %s170_s13 = scalar_lea.hbm %s880_s0, %s466_s10 }
  0x1a   : > { %s164_s2 = scalar_lea.vmem [#allocation5], %s465_s8  ;;  %s171_s27 = sshll.u32 %s170_s13, 4  ;;  %s172_s27 = int_to_ptr.hbm [resolvable:$true] %s171_s27 }
  0x1b   : > { %s173_s20 = sshll.u32 %s164_s2, 4  ;;  %s161_s28 = scalar_lea.sflag [#allocation6], %s160_s6  ;;  %s174_s20 = int_to_ptr.vmem [resolvable:$true] %s173_s20 }
  0x1c   : > { %s812_s23 = scalar_select %p40_p10, %s675_s16, %s42_s21  }
  0x1d   : > { %s690_s29 = smov 32   ;;  %s691_s7 = smov 2  }
  0x1e   : > { %487 = dma.hbm_to_vmem [thread:$0]  (!%p793_p2), %s172_s27, 96, %s174_s20, %s161_s28, %s690_s29, %s690_s29, %s691_s7  }
  0x1f   : > { %185 = sbr.rel (%p783_p12) target bundleno = 426 (0x1aa), region = 32  ;;  %s819_s9 = sand.u32 (!%p783_p12), 1, %s671_s15  }
  0x20   : > { %s467_s8 = smul.u32 (!%p783_p12), 6, %s819_s9  ;;  %s188_s21 = scalar_lea.sflag (!%p783_p12), [#allocation6], %s819_s9 }
  0x22   : > { %s191_s10 = scalar_lea.vmem (!%p783_p12), [#allocation5], %s467_s8 }
  0x24   : > { %654 = dma.done.wait (%p766_p7), %s188_s21, 96  }
  0x25   : > { %656 = vsyncadd (%p766_p7), %s188_s21, 4294967200 }
  0x26   : > { %658 = dma.done.wait (%p756_p3), [#allocation8], 16  }
  0x27   : > { %660 = vsyncadd (%p756_p3), [#allocation8], 4294967280 }
  0x28   : > { %202 = sfence }
  0x29   : > { %s222_s30 = sld [smem:[#allocation9]]  ;;  %v221_v0 = vld [vmem:[%s191_s10] sm:$0x3]  ;;  %v456_v2 = vld [vmem:[%s191_s10 + $0x2] sm:$0x3]  ;;  %s455_s22 = sshll.u32 %s819_s9, 1 }
  0x2a   : > { %s225_s4 = sld [smem:[#allocation4]]  ;;  %v458_v5 = vld [vmem:[%s191_s10 + $0x4] sm:$0x3]  ;;  %vm257_vm4 = vcmask 1041408   ;;  %s832_s24 = scalar_lea.vmem [#allocation10], %s455_s22  ;;  %vm284_vm5 = vcmask 0  }
  0x2b   : > { %s457_s6 = sld [smem:[#allocation9 + $0x1]]  ;;  %v692_v41 = vmov inf   ;;  %v693_v42 = vmov -inf   ;;  %v694_v43 = vmov 0   ;;  %s462_s2 = sshll.u32 %s679_s17, 1 }
  0x2c   : > { %s459_s11 = sld [smem:[#allocation9 + $0x2]]  ;;  %285 = vst.msk [vmem:[#allocation2] sm:$0x1] %vm284_vm5, %v692_v41  ;;  %550 = vset.pattern.permute.xlu1 %v694_v43  ;;  %551 = vset.pattern.permute.xlu0 %v694_v43  ;;  %s348_s28 = scalar_lea.hbm %s883_s3, %s462_s2 }
  0x2d   : > { %286 = vst.msk [vmem:[#allocation3] sm:$0x1] %vm284_vm5, %v693_v42  ;;  %s350_s29 = sshll.u32 %s832_s24, 4  ;;  %s352_s7 = sshll.u32 %s348_s28, 4  ;;  %s351_s29 = int_to_ptr.vmem [resolvable:$true] %s350_s29  ;;  %s353_s7 = int_to_ptr.hbm [resolvable:$true] %s352_s7 }
  0x2e   : > { %s338_s8 = scalar_lea.sflag [#allocation7], %s819_s9  ;;  %s615_s21 = sshra.s32 %s353_s7, 4  ;;  %s616_s21 = int_to_ptr.hbm [resolvable:$true] %s615_s21 }
  0x2f   : > { %v223_v1 = vstv %s222_s30  ;;  %s617_s10 = scalar_lea.hbm %s616_s21, 2  ;;  %p622_p11 = scmp.lt.s32.totalorder %s616_s21, %s883_s3 }
  0x30   : > { %v224_v3 = vmul.f32 %v223_v1, %v221_v0  ;;  %v226_v4 = vstv %s225_s4  ;;  %p618_p3 = scmp.ne.s32.totalorder %s616_s21, %s617_s10  ;;  %s621_s4 = scalar_lea.hbm %s883_s3, 4 }
  0x31   : > { %v231_v6 = vstv %s457_s6  ;;  %p623_p12 = scmp.lt.s32.totalorder %s621_s4, %s617_s10 }
  0x32   : > { %v227_v7 = vadd.f32 %v226_v4, %v224_v3  ;;  %v232_v8 = vmul.f32 %v456_v2, %v231_v6  ;;  %v237_v9 = vstv %s459_s11  ;;  %p619_p5 = pnand %p618_p3, %p770_p8 }
  0x33   : > { %v238_v10 = vmul.f32 %v458_v5, %v237_v9  ;;  %v287_v44 = vld [vmem:[#allocation2] sm:$0x1]  ;;  %p624_p0 = por %p623_p12, %p622_p11 }
  0x34   : > { %v233_v11 = vadd.f32 %v232_v8, %v227_v7  ;;  %v291_v47 = vld [vmem:[#allocation3] sm:$0x1]  ;;  %p620_p7 = pneg %p619_p5 }
  0x36   : > { %v239_v12 = vadd.f32 %v238_v10, %v233_v11  ;;  %p625_p1 = pnand %p624_p0, %p620_p7 }
  0x38   : > { %v240_v13 = vmax.f32 %v239_v12, 0.0 }
  0x3a   : > { %v241_v14 = vadd.f32 1.0, %v240_v13 }
  0x3c   : > { %552 = vrcp.f32 %v241_v14  ;;  %v253_v17 = vand.u32 2147483648, %v241_v14  ;;  %vm247_vm0 = vweird.f32 %v241_v14  ;;  %v251_v19 = vand.u32 2147483647, %v241_v14 }
  0x3e   : > { %v254_v21 = vor.u32 1.1754944e-38, %v253_v17  ;;  %vm252_vm3 = vcmp.eq.f32.partialorder %v251_v19, 8.507059e+37 }
  0x42   : > { %v553_v15 = vpop.eup %552 }
  0x43   : > { %v243_v16 = vmul.f32 %v553_v15, %v241_v14  ;;  %vm248_vm1 = vweird.f32 %v553_v15 }
  0x44   : > { %vm249_vm2 = vmor %vm247_vm0, %vm248_vm1 }
  0x45   : > { %v244_v18 = vsub.f32 1.0, %v243_v16 }
  0x47   : > { %v245_v20 = vmul.f32 %v553_v15, %v244_v18 }
  0x49   : > { %v246_v22 = vadd.f32 %v553_v15, %v245_v20 }
  0x4b   : > { %v250_v23 = vsel %vm249_vm2, %v553_v15, %v246_v22 }
  0x4c   : > { %v255_v24 = vsel %vm252_vm3, %v254_v21, %v250_v23 }
  0x4d   : > { %v258_v25 = vsel %vm257_vm4, %v255_v24, inf  ;;  %296 = vst [vmem:[%s832_s24] sm:$0x3] %v255_v24  ;;  %v269_v26 = vsel %vm257_vm4, %v255_v24, -inf }
  0x4e   : > { %259 = vmin.xlane.f32.xlu0 %v258_v25 }
  0x54   : > { %v321_v6 = vld [vmem:[%s832_s24] sm:$0x3] }
  0x56   : > { %270 = vmax.xlane.f32.xlu0 %v269_v26 }
  0xc1   : > { %v260_v27 = vpop.xlane.xlu0 %259 }
  0xc2   : > { %v261_v28 = vrot.slane %v260_v27, 4 }
  0xc4   : > { %v262_v29 = vmin.f32 %v260_v27, %v261_v28 }
  0xc6   : > { %v263_v30 = vrot.slane %v262_v29, 2 }
  0xc8   : > { %v264_v31 = vmin.f32 %v262_v29, %v263_v30 }
  0xc9   : > { %v271_v32 = vpop.xlane.xlu0 %270 }
  0xca   : > { %v272_v33 = vrot.slane %v271_v32, 4  ;;  %v265_v34 = vrot.slane %v264_v31, 1 }
  0xcc   : > { %v273_v35 = vmax.f32 %v271_v32, %v272_v33  ;;  %v266_v36 = vmin.f32 %v264_v31, %v265_v34 }
  0xce   : > { %v274_v37 = vrot.slane %v273_v35, 2  ;;  %468 = vpush %v266_v36 }
  0xd0   : > { %v275_v38 = vmax.f32 %v273_v35, %v274_v37 }
  0xd2   : > { %v276_v39 = vrot.slane %v275_v38, 1 }
  0xd4   : > { %v277_v40 = vmax.f32 %v275_v38, %v276_v39 }
  0xd6   : > { %470 = vpush %v277_v40 }
  0xff   : > { %s469_s12 = spop %468 }
 0x100   : > { %v268_v45 = vstv %s469_s12 }
 0x101   : > { %v288_v46 = vmin.f32 %v287_v44, %v268_v45 }
 0x103   : > { %290 = vst.msk [vmem:[#allocation2] sm:$0x1] %vm284_vm5, %v288_v46 }
 0x107   : > { %s471_s13 = spop %470 }
 0x108   : > { %v279_v48 = vstv %s471_s13 }
 0x109   : > { %v292_v49 = vmax.f32 %v291_v47, %v279_v48 }
 0x10a   : > { %v300_v50 = vld [vmem:[#allocation2] sm:$0x1] }
 0x10b   : > { %293 = vst.msk [vmem:[#allocation3] sm:$0x1] %vm284_vm5, %v292_v49 }
 0x112   : > { %v301_v51 = vld [vmem:[#allocation3] sm:$0x1] }
 0x113   : > { %v302_v52 = vsub.f32 %v301_v51, %v300_v50 }
 0x115   : > { %554 = vrcp.f32 %v302_v52  ;;  %v314_v56 = vand.u32 2147483648, %v302_v52  ;;  %v312_v58 = vand.u32 2147483647, %v302_v52  ;;  %vm308_vm7 = vweird.f32 %v302_v52 }
 0x117   : > { %v315_v60 = vor.u32 1.1754944e-38, %v314_v56  ;;  %vm313_vm9 = vcmp.eq.f32.partialorder %v312_v58, 8.507059e+37 }
 0x11b   : > { %v555_v53 = vpop.eup %554 }
 0x11c   : > { %v304_v54 = vmul.f32 %v555_v53, %v302_v52  ;;  %vm309_vm6 = vweird.f32 %v555_v53 }
 0x11d   : > { %vm310_vm8 = vmor %vm308_vm7, %vm309_vm6 }
 0x11e   : > { %v305_v55 = vsub.f32 1.0, %v304_v54 }
 0x120   : > { %v306_v57 = vmul.f32 %v555_v53, %v305_v55 }
 0x122   : > { %v307_v59 = vadd.f32 %v555_v53, %v306_v57 }
 0x124   : > { %v311_v61 = vsel %vm310_vm8, %v555_v53, %v307_v59 }
 0x125   : > { %v316_v62 = vsel %vm313_vm9, %v315_v60, %v311_v61 }
 0x126   : > { %v317_v63 = vmul.f32 2.0, %v316_v62 }
 0x128   : > { %v323_v0 = vperm.slane %v317_v63, 0  ;;  %v318_v1 = vmul.f32 %v317_v63, %v300_v50 }
 0x12a   : > { %325 = vperm.xlu1 %550, %v323_v0   ;;  %v319_v2 = vsub.f32 0.0, %v318_v1 }
 0x12c   : > { %v460_v3 = vadd.f32 -1.0, %v319_v2 }
 0x12e   : > { %v330_v4 = vperm.slane %v460_v3, 0 }
 0x132   : > { %332 = vperm.xlu1 %550, %v330_v4  }
 0x19c   : > { %v326_v5 = vpop.permute.xlu1 %325 }
 0x19d   : > { %v328_v7 = vmul.f32 %v326_v5, %v321_v6 }
 0x1a4   : > { %v333_v8 = vpop.permute.xlu1 %332 }
 0x1a5   : > { %v335_v9 = vadd.f32 %v333_v8, %v328_v7 }
 0x1a7   : > { %336 = vst [vmem:[%s832_s24] sm:$0x3] %v335_v9 }
 0x1a8   : > { %628 = shalt.err (!%p625_p1)
}
 0x1a9   : > { %478 = dma.vmem_to_hbm [thread:$0]  (%p770_p8), %s351_s29, 32, %s353_s7, %s338_s8  }
 0x1aa PF: > { %s364_s9 = sand.u32 1, %s667_s14   ;;  %p489_p2 = pnand %p451_p13, %p774_p9 }
 0x1ab   : > { %s365_s22 = scalar_lea.sflag [#allocation7], %s364_s9 }
 0x1ac   : > { %p490_p4 = pneg %p489_p2 }
 0x1ae   : > { %662 = dma.done.wait (%p490_p4), %s365_s22, 32  }
 0x1af   : > { %664 = vsyncadd (%p490_p4), %s365_s22, 4294967264  ;;  %s21_s19 = sadd.s32 1, %s687_s19   ;;  %s891_s14 = smov %s671_s15 }
 0x1b0   : > { %p18_p6 = scmp.ge.s32.totalorder %s21_s19, 4   ;;  %s892_s15 = smov %s675_s16 }
 0x1b1   : > { %s893_s16 = smov %s812_s23  ;;  %s894_s17 = smov %s683_s18 }
 0x1b2   : > { %s895_s18 = smov %s897_s5  ;;  %20 = sbr.rel (!%p18_p6) target bundleno = 9 (0x9), region = 93 }
 0x1b7   :  { %371 = vsyncpa [#allocation6], 1 }
 0x1b8   :  { %373 = vsyncpa [#allocation6 + $0x1], 1 }
 0x1b9   :  { %374 = vsyncpa [#allocation7], 1 }
 0x1ba   :  { %376 = vsyncpa [#allocation7 + $0x1], 1 }
 0x1bb   :  { %377 = vsyncpa [#allocation8], 1 }
 0x1bc   :  { %379 = vsyncpa [#allocation8 + $0x1], 1 }

</bundles_post_ra>
